<compile_context>
chip_gen: v5e
topology: v5e:2x2
jax: 0.10.0
libtpu: 0.0.40
codegen_flags: <defaults>
</compile_context>

<pallas_src>
import functools

import jax
import jax.numpy as jnp
from jax.experimental import pallas as pl
from jax.experimental.pallas import tpu as pltpu


def _round_up(n, m):
    return ((n + m - 1) // m) * m


def _vmem_capacity_bytes():
    """Best-effort per-core VMEM size of the local TPU generation."""
    try:
        info = pltpu.get_tpu_info()
        for attr in ("vmem_capacity_bytes", "vmem_bytes", "vmem_capacity"):
            v = getattr(info, attr, None)
            if v:
                return int(v)
    except Exception:
        pass
    return 64 << 20          # conservative fallback (v7x per-TensorCore VMEM)


def _sepconv_kernel(x_ref, w1_ref, b1_ref, wd_ref, w2_ref, b2_ref,
                    o_ref, carry_ref, *, k_taps, tile_l, halo):
    """One (batch, L-tile) grid step.

    x_ref     : (1, TL, C_in)      input tile, channels-last
    w1_ref    : (C_in, Ci_p)       pre pointwise weight (transposed), compute dtype
    b1_ref    : (1, Ci_p)          f32
    wd_ref    : (K, Ci_p)          depthwise taps (tap, channel), f32
    w2_ref    : (Ci_p, Co_p)       post pointwise weight (transposed), compute dtype
    b2_ref    : (1, Co_p)          f32, depthwise bias already folded in
    o_ref     : (1, TL, Co_p)
    carry_ref : (halo, Ci_p) f32   last `halo` rows of the previous tile's h1
    """
    j = pl.program_id(1)

    # NOTE(correctness): the carry requires the L axis (grid axis 1) to iterate
    # in order on one core, i.e. it must stay "arbitrary" (only the batch axis
    # may be "parallel"), and the grid order must stay (batch outer, L inner).
    @pl.when(j == 0)
    def _():
        carry_ref[...] = jnp.zeros_like(carry_ref)

    x = x_ref[0]                                           # (TL, C_in)

    # --- pre point-wise conv (1x1) == channel matmul on the MXU, f32 acc ---
    h1 = (jnp.dot(x, w1_ref[...], preferred_element_type=jnp.float32)
          + b1_ref[...])                                   # (TL, Ci_p) f32

    # --- depthwise conv, body: one roll of the *current* tile per tap ---
    # Rows i >= K-1 are exact; rows i < K-1 wrap around the tile and are fixed
    # by the small head path below (no full-tile roll of the previous tile and
    # no full-tile select anymore).
    wd_last = wd_ref[k_taps - 1:k_taps, :]                 # (1, Ci_p) tap s=0
    acc = h1 * wd_last
    for t in range(k_taps - 1):                            # static, unrolled
        s = (k_taps - 1) - t
        acc = acc + pltpu.roll(h1, shift=s, axis=0) * wd_ref[t:t + 1, :]

    # --- depthwise conv, head: first `halo` rows mix the carried prev tail ---
    h1_head = h1[:halo, :]                                 # (halo, Ci_p)
    prev = carry_ref[...]                                  # (halo, Ci_p)
    row = jax.lax.broadcasted_iota(jnp.int32, (halo, 1), 0)
    hacc = h1_head * wd_last
    for t in range(k_taps - 1):
        s = (k_taps - 1) - t
        cur_s = pltpu.roll(h1_head, shift=s, axis=0)       # tiny (<=2 vregs/lane grp)
        prv_s = pltpu.roll(prev, shift=s, axis=0)
        hacc = hacc + jnp.where(row >= s, cur_s, prv_s) * wd_ref[t:t + 1, :]

    # Save this tile's tail as the causal halo for the next L tile (small store).
    carry_ref[...] = h1[tile_l - halo:, :]

    # --- post point-wise conv (1x1); depthwise bias folded into b2 ---
    out_body = (jnp.dot(acc.astype(w2_ref.dtype), w2_ref[...],
                        preferred_element_type=jnp.float32) + b2_ref[...])
    o_ref[0] = out_body.astype(o_ref.dtype)
    out_head = (jnp.dot(hacc.astype(w2_ref.dtype), w2_ref[...],
                        preferred_element_type=jnp.float32) + b2_ref[...])
    o_ref[0, pl.ds(0, halo), :] = out_head.astype(o_ref.dtype)


def _pick_block_l(L, K, halo, c_in, ci_p, co_p, x_bytes, w_bytes, out_bytes,
                  budget_bytes):
    """Largest L tile (multiple of 8) fitting a conservative VMEM budget."""
    # Tile-size-independent VMEM: weight/bias blocks (counted as double-
    # buffered so the estimate stays safe even on the no-pipeline_mode
    # fallback path) + the halo carry scratch.
    fixed = (2 * w_bytes * (c_in * ci_p + ci_p * co_p)
             + 2 * 4 * ((K + 1) * ci_p + co_p)
             + 4 * halo * ci_p)
    # Per-row bytes: double-buffered x and out blocks + f32 intermediates
    # (h1, acc, one roll temp) + the f32 out_body before the final cast.
    per_row = (2 * c_in * x_bytes + 2 * co_p * out_bytes
               + 4 * (3 * ci_p + 2 * co_p))
    tl = 2048
    while tl > 8 and fixed + tl * per_row > budget_bytes:
        tl //= 2
    tl = max(tl, halo)
    return min(tl, max(_round_up(L, 8), halo))


def separable_conv1d(x_ncl, w1, b1, wd, bd, w2, b2, *, kernel_size, padding,
                     block_l=None, compute_dtype=None, out_dtype=None):
    """x_ncl: (B, C_in, L) (PyTorch layout). Returns (B, C_out, L + 2*padding - K + 1).

    compute_dtype: dtype for the two pointwise matmuls (e.g. jnp.bfloat16 on
      v5e); depthwise / bias math stays f32.  out_dtype defaults to
      compute_dtype (f32 if both are None).  NOTE: when compute_dtype=bf16 the
      `lead` constant rows (see below) are computed in f32 in the wrapper, so
      they are slightly more precise than the kernel rows.
    """
    pad = padding * 2                       # module does F.pad(x, (padding*2, 0))
    K = kernel_size
    assert wd.shape[0] == K
    B, c_in, L = x_ncl.shape
    c_inner = w1.shape[1]
    c_out = w2.shape[1]
    l_out = L + pad - K + 1
    assert l_out > 0

    halo = max(8, _round_up(K - 1, 8))      # carried causal history (sublane-aligned)

    w_dtype = jnp.dtype(compute_dtype) if compute_dtype is not None else jnp.dtype(jnp.float32)
    o_dtype = jnp.dtype(out_dtype) if out_dtype is not None else w_dtype
    x_dtype = w_dtype if compute_dtype is not None else jnp.dtype(x_ncl.dtype)

    # Fold the depthwise bias into the post-pointwise bias (exact by linearity).
    b2_eff = (bd.astype(jnp.float32) @ w2.astype(jnp.float32)
              + b2.astype(jnp.float32))                    # (1, C_out) f32

    # ---- lane-dense channel padding (exact: padded columns produce zeros) ----
    ci_p = _round_up(c_inner, 128)
    co_p = _round_up(c_out, 128)
    w1p = jnp.pad(w1, ((0, 0), (0, ci_p - c_inner))).astype(w_dtype)
    b1p = jnp.pad(b1, ((0, 0), (0, ci_p - c_inner))).astype(jnp.float32)
    wdp = jnp.pad(wd, ((0, 0), (0, ci_p - c_inner))).astype(jnp.float32)
    w2p = jnp.pad(w2, ((0, ci_p - c_inner), (0, co_p - c_out))).astype(w_dtype)
    b2p = jnp.pad(b2_eff, ((0, 0), (0, co_p - c_out))).astype(jnp.float32)

    # ---- generation-aware L tiling / VMEM limit ----
    cap = _vmem_capacity_bytes()
    x_bytes = jnp.dtype(x_dtype).itemsize
    w_bytes = jnp.dtype(w_dtype).itemsize
    out_bytes = jnp.dtype(o_dtype).itemsize
    if block_l is None:
        tl = _pick_block_l(L, K, halo, c_in, ci_p, co_p, x_bytes, w_bytes,
                           out_bytes, budget_bytes=int(cap * 0.70))
    else:
        tl = int(block_l)
        if tl % 8 != 0:
            raise ValueError(f"block_l must be a multiple of 8, got {tl}")
        if tl < halo:
            raise ValueError(
                f"block_l={tl} too small: the causal halo needs >= {halo} rows "
                f"(kernel_size={K})")
    vmem_limit = int(cap * 0.85)

    L_pad = _round_up(L, tl)
    n_l = L_pad // tl

    x_blc = jnp.transpose(x_ncl, (0, 2, 1))                # (B, L, C_in)
    if L_pad != L:
        x_blc = jnp.pad(x_blc, ((0, 0), (0, L_pad - L), (0, 0)))
    x_blc = x_blc.astype(x_dtype)

    kernel = functools.partial(_sepconv_kernel, k_taps=K, tile_l=tl, halo=halo)

    flops = 2 * B * L_pad * (c_in * ci_p + ci_p * co_p + 2 * K * ci_p)
    bytes_accessed = (B * L_pad * c_in * x_bytes
                      + B * L_pad * co_p * out_bytes
                      + (w1p.size + w2p.size) * w_bytes
                      + (b1p.size + wdp.size + b2p.size) * 4)

    def build(single_buffer_weights):
        def const_spec(shape):
            idx = lambda b, j, _n=len(shape): (0,) * _n
            if single_buffer_weights:
                # Grid-invariant blocks: one buffer is enough.
                return pl.BlockSpec(shape, idx, pipeline_mode=pl.Buffered(1))
            return pl.BlockSpec(shape, idx)

        grid_spec = pltpu.PrefetchScalarGridSpec(
            num_scalar_prefetch=0,
            grid=(B, n_l),
            in_specs=[
                pl.BlockSpec((1, tl, c_in), lambda b, j: (b, j, 0)),
                const_spec((c_in, ci_p)),
                const_spec((1, ci_p)),
                const_spec((K, ci_p)),
                const_spec((ci_p, co_p)),
                const_spec((1, co_p)),
            ],
            out_specs=pl.BlockSpec((1, tl, co_p), lambda b, j: (b, j, 0)),
            scratch_shapes=[pltpu.VMEM((halo, ci_p), jnp.float32)],
        )
        return pl.pallas_call(
            kernel,
            out_shape=jax.ShapeDtypeStruct((B, L_pad, co_p), o_dtype),
            grid_spec=grid_spec,
            compiler_params=pltpu.CompilerParams(
                dimension_semantics=("parallel", "arbitrary"),
                vmem_limit_bytes=vmem_limit),
            cost_estimate=pl.CostEstimate(flops=flops, transcendentals=0,
                                          bytes_accessed=bytes_accessed),
        )

    args = (x_blc, w1p, b1p, wdp, w2p, b2p)
    try:
        out_causal = build(True)(*args)
    except Exception:
        # pipeline_mode / pl.Buffered not supported by this JAX: use defaults.
        out_causal = build(False)(*args)

    out_causal = out_causal[:, :L, :c_out]                 # drop L / channel padding

    # ---- map causal (pad_eff = K-1) result to the module's pad = 2*padding ----
    lead = pad - (K - 1)
    if lead > 0:
        # First `lead` outputs see only zero padding -> depthwise-bias path only.
        const = b2_eff.astype(out_causal.dtype)            # (1, C_out)
        out_blc = jnp.concatenate(
            [jnp.broadcast_to(const[None], (B, lead, c_out)), out_causal], axis=1)
    elif lead < 0:
        out_blc = out_causal[:, -lead:-lead + l_out, :]
    else:
        out_blc = out_causal

    return jnp.transpose(out_blc, (0, 2, 1))               # (B, C_out, l_out)


def _reference(x_ncl, w1, b1, wd, bd, w2, b2, *, kernel_size, padding):
    """Plain-JAX reference mirroring the PyTorch forward."""
    pad = padding * 2
    K = kernel_size
    x = jnp.transpose(x_ncl, (0, 2, 1))                    # (B, L, C_in)
    h1 = x @ w1 + b1                                       # pre point-wise
    hp = jnp.pad(h1, ((0, 0), (pad, 0), (0, 0)))           # left zero-pad
    l_out = h1.shape[1] + pad - K + 1
    h2 = sum(hp[:, t:t + l_out, :] * wd[t][None, None, :] for t in range(K)) + bd
    out = h2 @ w2 + b2                                     # post point-wise
    return jnp.transpose(out, (0, 2, 1))


if __name__ == "__main__":
    # Small shapes consistent with the module: (batch, in_channels, length)
    B, C_IN, C_INNER, C_OUT, L = 2, 4, 8, 6, 16
    KERNEL_SIZE, PADDING = 3, 1                            # pad*2 = K-1 -> l_out == L

    key = jax.random.PRNGKey(0)
    ks = jax.random.split(key, 7)

    x = jax.random.normal(ks[0], (B, C_IN, L), dtype=jnp.float32)

    # PyTorch Conv1d weight shapes, rearranged:
    # pre_point_wise.weight  (C_INNER, C_IN, 1)  -> w1 (C_IN, C_INNER)
    # deep_wise.weight       (C_INNER, 1, K)     -> wd (K, C_INNER)
    # post_point_wise.weight (C_OUT, C_INNER, 1) -> w2 (C_INNER, C_OUT)
    w1 = jax.random.normal(ks[1], (C_IN, C_INNER), dtype=jnp.float32) * 0.2
    b1 = jax.random.normal(ks[2], (1, C_INNER), dtype=jnp.float32) * 0.1
    wd = jax.random.normal(ks[3], (KERNEL_SIZE, C_INNER), dtype=jnp.float32) * 0.2
    bd = jax.random.normal(ks[4], (1, C_INNER), dtype=jnp.float32) * 0.1
    w2 = jax.random.normal(ks[5], (C_INNER, C_OUT), dtype=jnp.float32) * 0.2
    b2 = jax.random.normal(ks[6], (1, C_OUT), dtype=jnp.float32) * 0.1

    out = separable_conv1d(x, w1, b1, wd, bd, w2, b2,
                           kernel_size=KERNEL_SIZE, padding=PADDING)
    out = jax.block_until_ready(out)

    ref = _reference(x, w1, b1, wd, bd, w2, b2,
                     kernel_size=KERNEL_SIZE, padding=PADDING)

    assert out.shape == (B, C_OUT, L), out.shape
    assert jnp.allclose(out, ref, atol=1e-5, rtol=1e-5), "mismatch vs reference"
    print("KERNEL_OK")
</pallas_src>

<mosaic_0001>
module attributes {stable_mosaic.version = 11 : i64} {
  func.func @_sepconv_kernel(%arg0: i32, %arg1: i32, %arg2: memref<1x16x4xf32, #tpu.memory_space<vmem>>, %arg3: memref<4x128xf32, #tpu.memory_space<vmem>>, %arg4: memref<1x128xf32, #tpu.memory_space<vmem>>, %arg5: memref<3x128xf32, #tpu.memory_space<vmem>>, %arg6: memref<128x128xf32, #tpu.memory_space<vmem>>, %arg7: memref<1x128xf32, #tpu.memory_space<vmem>>, %arg8: memref<1x16x128xf32, #tpu.memory_space<vmem>>, %arg9: memref<8x128xf32, #tpu.memory_space<vmem>>) attributes {dimension_semantics = [#tpu.dimension_semantics<parallel>, #tpu.dimension_semantics<arbitrary>], iteration_bounds = array<i64: 2, 1>, scalar_prefetch = 0 : i64, scratch_operands = 1 : i64, tpu.core_type = #tpu.core_type<tc>, window_params = [{transform_indices = @transform_0, window_bounds = array<i64: 1, 16, 4>}, {pipeline_mode = #tpu.pipeline_mode<synchronous>, transform_indices = @transform_1, window_bounds = array<i64: 4, 128>}, {pipeline_mode = #tpu.pipeline_mode<synchronous>, transform_indices = @transform_2, window_bounds = array<i64: 1, 128>}, {pipeline_mode = #tpu.pipeline_mode<synchronous>, transform_indices = @transform_3, window_bounds = array<i64: 3, 128>}, {pipeline_mode = #tpu.pipeline_mode<synchronous>, transform_indices = @transform_4, window_bounds = array<i64: 128, 128>}, {pipeline_mode = #tpu.pipeline_mode<synchronous>, transform_indices = @transform_5, window_bounds = array<i64: 1, 128>}, {transform_indices = @transform_6, window_bounds = array<i64: 1, 16, 128>}]} {
    %c0_i32 = arith.constant 0 : i32
    %0 = arith.cmpi eq, %arg1, %c0_i32 : i32
    %1 = arith.extui %0 : i1 to i32
    %c0_i32_0 = arith.constant 0 : i32
    %2 = arith.cmpi ne, %1, %c0_i32_0 : i32
    scf.if %2 {
      %cst_41 = arith.constant 0.000000e+00 : f32
      %68 = vector.broadcast %cst_41 : f32 to vector<8x128xf32>
      %c0_42 = arith.constant 0 : index
      %c0_43 = arith.constant 0 : index
      %69 = vector.load %arg9[%c0_42, %c0_43] : memref<8x128xf32, #tpu.memory_space<vmem>>, vector<8x128xf32>
      tpu.vector_store %arg9[%c0_42, %c0_43], %68 {strides = array<i32>} : memref<8x128xf32, #tpu.memory_space<vmem>>, vector<8x128xf32>,
    } else {
    }
    %c0 = arith.constant 0 : index
    %c0_1 = arith.constant 0 : index
    %c0_2 = arith.constant 0 : index
    %3 = vector.load %arg2[%c0, %c0_1, %c0_2] : memref<1x16x4xf32, #tpu.memory_space<vmem>>, vector<1x16x4xf32>
    %4 = vector.shape_cast %3 : vector<1x16x4xf32> to vector<16x4xf32>
    %c0_3 = arith.constant 0 : index
    %c0_4 = arith.constant 0 : index
    %5 = vector.load %arg3[%c0_3, %c0_4] : memref<4x128xf32, #tpu.memory_space<vmem>>, vector<4x128xf32>
    %cst = arith.constant dense<0.000000e+00> : vector<16x128xf32>
    %6 = tpu.matmul %4, %5, %cst {dimension_numbers = #tpu.dot_dimension_numbers<[1], [0], [0], [1], [0, 0, 1, 1], [], []>} : vector<16x4xf32>, vector<4x128xf32>, vector<16x128xf32> -> vector<16x128xf32>
    %c0_5 = arith.constant 0 : index
    %c0_6 = arith.constant 0 : index
    %7 = vector.load %arg4[%c0_5, %c0_6] : memref<1x128xf32, #tpu.memory_space<vmem>>, vector<1x128xf32>
    %8 = vector.broadcast %7 : vector<1x128xf32> to vector<16x128xf32>
    %9 = arith.addf %6, %8 : vector<16x128xf32>
    %c2 = arith.constant 2 : index
    %c0_7 = arith.constant 0 : index
    %10 = vector.load %arg5[%c2, %c0_7] : memref<3x128xf32, #tpu.memory_space<vmem>>, vector<1x128xf32>
    %11 = vector.broadcast %10 : vector<1x128xf32> to vector<16x128xf32>
    %12 = arith.mulf %9, %11 : vector<16x128xf32>
    %c2_i32 = arith.constant 2 : i32
    %13 = tpu.dynamic_rotate %9 by %c2_i32 dim 0 : vector<16x128xf32>, i32 -> vector<16x128xf32>
    %c0_8 = arith.constant 0 : index
    %c0_9 = arith.constant 0 : index
    %14 = vector.load %arg5[%c0_8, %c0_9] : memref<3x128xf32, #tpu.memory_space<vmem>>, vector<1x128xf32>
    %15 = vector.broadcast %14 : vector<1x128xf32> to vector<16x128xf32>
    %16 = arith.mulf %13, %15 : vector<16x128xf32>
    %17 = arith.addf %12, %16 : vector<16x128xf32>
    %c1_i32 = arith.constant 1 : i32
    %18 = tpu.dynamic_rotate %9 by %c1_i32 dim 0 : vector<16x128xf32>, i32 -> vector<16x128xf32>
    %c1 = arith.constant 1 : index
    %c0_10 = arith.constant 0 : index
    %19 = vector.load %arg5[%c1, %c0_10] : memref<3x128xf32, #tpu.memory_space<vmem>>, vector<1x128xf32>
    %20 = vector.broadcast %19 : vector<1x128xf32> to vector<16x128xf32>
    %21 = arith.mulf %18, %20 : vector<16x128xf32>
    %22 = arith.addf %17, %21 : vector<16x128xf32>
    %23 = vector.extract_strided_slice %9 {offsets = [0, 0], sizes = [8, 128], strides = [1, 1]} : vector<16x128xf32> to vector<8x128xf32>
    %c0_11 = arith.constant 0 : index
    %c0_12 = arith.constant 0 : index
    %24 = vector.load %arg9[%c0_11, %c0_12] : memref<8x128xf32, #tpu.memory_space<vmem>>, vector<8x128xf32>
    %25 = tpu.iota {dimensions = array<i32: 0>} : vector<8x1xi32>
    %26 = vector.broadcast %10 : vector<1x128xf32> to vector<8x128xf32>
    %27 = arith.mulf %23, %26 : vector<8x128xf32>
    %c2_i32_13 = arith.constant 2 : i32
    %28 = tpu.dynamic_rotate %23 by %c2_i32_13 dim 0 : vector<8x128xf32>, i32 -> vector<8x128xf32>
    %c2_i32_14 = arith.constant 2 : i32
    %29 = tpu.dynamic_rotate %24 by %c2_i32_14 dim 0 : vector<8x128xf32>, i32 -> vector<8x128xf32>
    %c2_i32_15 = arith.constant 2 : i32
    %30 = vector.broadcast %c2_i32_15 : i32 to vector<8x1xi32>
    %31 = arith.cmpi sge, %25, %30 : vector<8x1xi32>
    %32 = vector.shape_cast %31 : vector<8x1xi1> to vector<8x1xi1>
    %33 = vector.broadcast %32 : vector<8x1xi1> to vector<8x128xi1>
    %34 = arith.select %33, %28, %29 : vector<8x128xi1>, vector<8x128xf32>
    %c0_16 = arith.constant 0 : index
    %c0_17 = arith.constant 0 : index
    %35 = vector.load %arg5[%c0_16, %c0_17] : memref<3x128xf32, #tpu.memory_space<vmem>>, vector<1x128xf32>
    %36 = vector.broadcast %35 : vector<1x128xf32> to vector<8x128xf32>
    %37 = arith.mulf %34, %36 : vector<8x128xf32>
    %38 = arith.addf %27, %37 : vector<8x128xf32>
    %c1_i32_18 = arith.constant 1 : i32
    %39 = tpu.dynamic_rotate %23 by %c1_i32_18 dim 0 : vector<8x128xf32>, i32 -> vector<8x128xf32>
    %c1_i32_19 = arith.constant 1 : i32
    %40 = tpu.dynamic_rotate %24 by %c1_i32_19 dim 0 : vector<8x128xf32>, i32 -> vector<8x128xf32>
    %c1_i32_20 = arith.constant 1 : i32
    %41 = vector.broadcast %c1_i32_20 : i32 to vector<8x1xi32>
    %42 = arith.cmpi sge, %25, %41 : vector<8x1xi32>
    %43 = vector.shape_cast %42 : vector<8x1xi1> to vector<8x1xi1>
    %44 = vector.broadcast %43 : vector<8x1xi1> to vector<8x128xi1>
    %45 = arith.select %44, %39, %40 : vector<8x128xi1>, vector<8x128xf32>
    %c1_21 = arith.constant 1 : index
    %c0_22 = arith.constant 0 : index
    %46 = vector.load %arg5[%c1_21, %c0_22] : memref<3x128xf32, #tpu.memory_space<vmem>>, vector<1x128xf32>
    %47 = vector.broadcast %46 : vector<1x128xf32> to vector<8x128xf32>
    %48 = arith.mulf %45, %47 : vector<8x128xf32>
    %49 = arith.addf %38, %48 : vector<8x128xf32>
    %50 = vector.extract_strided_slice %9 {offsets = [8, 0], sizes = [8, 128], strides = [1, 1]} : vector<16x128xf32> to vector<8x128xf32>
    %c0_23 = arith.constant 0 : index
    %c0_24 = arith.constant 0 : index
    %51 = vector.load %arg9[%c0_23, %c0_24] : memref<8x128xf32, #tpu.memory_space<vmem>>, vector<8x128xf32>
    tpu.vector_store %arg9[%c0_23, %c0_24], %50 {strides = array<i32>} : memref<8x128xf32, #tpu.memory_space<vmem>>, vector<8x128xf32>,
    %c0_25 = arith.constant 0 : index
    %c0_26 = arith.constant 0 : index
    %52 = vector.load %arg6[%c0_25, %c0_26] : memref<128x128xf32, #tpu.memory_space<vmem>>, vector<128x128xf32>
    %cst_27 = arith.constant dense<0.000000e+00> : vector<16x128xf32>
    %53 = tpu.matmul %22, %52, %cst_27 {dimension_numbers = #tpu.dot_dimension_numbers<[1], [0], [0], [1], [0, 0, 1, 1], [], []>} : vector<16x128xf32>, vector<128x128xf32>, vector<16x128xf32> -> vector<16x128xf32>
    %c0_28 = arith.constant 0 : index
    %c0_29 = arith.constant 0 : index
    %54 = vector.load %arg7[%c0_28, %c0_29] : memref<1x128xf32, #tpu.memory_space<vmem>>, vector<1x128xf32>
    %55 = vector.broadcast %54 : vector<1x128xf32> to vector<16x128xf32>
    %56 = arith.addf %53, %55 : vector<16x128xf32>
    %c0_30 = arith.constant 0 : index
    %c0_31 = arith.constant 0 : index
    %c0_32 = arith.constant 0 : index
    %57 = vector.load %arg8[%c0_30, %c0_31, %c0_32] : memref<1x16x128xf32, #tpu.memory_space<vmem>>, vector<1x16x128xf32>
    %58 = vector.shape_cast %57 : vector<1x16x128xf32> to vector<16x128xf32>
    %59 = vector.shape_cast %56 : vector<16x128xf32> to vector<1x16x128xf32>
    tpu.vector_store %arg8[%c0_30, %c0_31, %c0_32], %59 {strides = array<i32>} : memref<1x16x128xf32, #tpu.memory_space<vmem>>, vector<1x16x128xf32>,
    %c0_33 = arith.constant 0 : index
    %c0_34 = arith.constant 0 : index
    %60 = vector.load %arg6[%c0_33, %c0_34] : memref<128x128xf32, #tpu.memory_space<vmem>>, vector<128x128xf32>
    %cst_35 = arith.constant dense<0.000000e+00> : vector<8x128xf32>
    %61 = tpu.matmul %49, %60, %cst_35 {dimension_numbers = #tpu.dot_dimension_numbers<[1], [0], [0], [1], [0, 0, 1, 1], [], []>} : vector<8x128xf32>, vector<128x128xf32>, vector<8x128xf32> -> vector<8x128xf32>
    %c0_36 = arith.constant 0 : index
    %c0_37 = arith.constant 0 : index
    %62 = vector.load %arg7[%c0_36, %c0_37] : memref<1x128xf32, #tpu.memory_space<vmem>>, vector<1x128xf32>
    %63 = vector.broadcast %62 : vector<1x128xf32> to vector<8x128xf32>
    %64 = arith.addf %61, %63 : vector<8x128xf32>
    %c0_38 = arith.constant 0 : index
    %c0_39 = arith.constant 0 : index
    %c0_40 = arith.constant 0 : index
    %65 = vector.load %arg8[%c0_38, %c0_39, %c0_40] : memref<1x16x128xf32, #tpu.memory_space<vmem>>, vector<1x8x128xf32>
    %66 = vector.shape_cast %65 : vector<1x8x128xf32> to vector<8x128xf32>
    %67 = vector.shape_cast %64 : vector<8x128xf32> to vector<1x8x128xf32>
    tpu.vector_store %arg8[%c0_38, %c0_39, %c0_40], %67 {strides = array<i32>} : memref<1x16x128xf32, #tpu.memory_space<vmem>>, vector<1x8x128xf32>,
    return
  }
  func.func @transform_0(%arg0: i32, %arg1: i32) -> (i32, i32, i32) {
    %c0_i32 = arith.constant 0 : i32
    %c0_i32_0 = arith.constant 0 : i32
    return %arg0, %arg1, %c0_i32 : i32, i32, i32
  }
  func.func @transform_1(%arg0: i32, %arg1: i32) -> (i32, i32) {
    %c0_i32 = arith.constant 0 : i32
    %c0_i32_0 = arith.constant 0 : i32
    %c0_i32_1 = arith.constant 0 : i32
    return %c0_i32, %c0_i32_0 : i32, i32
  }
  func.func @transform_2(%arg0: i32, %arg1: i32) -> (i32, i32) {
    %c0_i32 = arith.constant 0 : i32
    %c0_i32_0 = arith.constant 0 : i32
    %c0_i32_1 = arith.constant 0 : i32
    return %c0_i32, %c0_i32_0 : i32, i32
  }
  func.func @transform_3(%arg0: i32, %arg1: i32) -> (i32, i32) {
    %c0_i32 = arith.constant 0 : i32
    %c0_i32_0 = arith.constant 0 : i32
    %c0_i32_1 = arith.constant 0 : i32
    return %c0_i32, %c0_i32_0 : i32, i32
  }
  func.func @transform_4(%arg0: i32, %arg1: i32) -> (i32, i32) {
    %c0_i32 = arith.constant 0 : i32
    %c0_i32_0 = arith.constant 0 : i32
    %c0_i32_1 = arith.constant 0 : i32
    return %c0_i32, %c0_i32_0 : i32, i32
  }
  func.func @transform_5(%arg0: i32, %arg1: i32) -> (i32, i32) {
    %c0_i32 = arith.constant 0 : i32
    %c0_i32_0 = arith.constant 0 : i32
    %c0_i32_1 = arith.constant 0 : i32
    return %c0_i32, %c0_i32_0 : i32, i32
  }
  func.func @transform_6(%arg0: i32, %arg1: i32) -> (i32, i32, i32) {
    %c0_i32 = arith.constant 0 : i32
    %c0_i32_0 = arith.constant 0 : i32
    return %arg0, %arg1, %c0_i32 : i32, i32, i32
  }
}

module attributes {stable_mosaic.version = 11 : i64} {
  func.func @_sepconv_kernel(%arg0: i32, %arg1: i32, %arg2: memref<1x16x4xf32, #tpu.memory_space<vmem>>, %arg3: memref<4x128xf32, #tpu.memory_space<vmem>>, %arg4: memref<1x128xf32, #tpu.memory_space<vmem>>, %arg5: memref<3x128xf32, #tpu.memory_space<vmem>>, %arg6: memref<128x128xf32, #tpu.memory_space<vmem>>, %arg7: memref<1x128xf32, #tpu.memory_space<vmem>>, %arg8: memref<1x16x128xf32, #tpu.memory_space<vmem>>, %arg9: memref<8x128xf32, #tpu.memory_space<vmem>>) attributes {dimension_semantics = [#tpu.dimension_semantics<parallel>, #tpu.dimension_semantics<arbitrary>], iteration_bounds = array<i64: 2, 1>, scalar_prefetch = 0 : i64, scratch_operands = 1 : i64, tpu.core_type = #tpu.core_type<tc>, window_params = [{transform_indices = @transform_0, window_bounds = array<i64: 1, 16, 4>}, {pipeline_mode = #tpu.pipeline_mode<synchronous>, transform_indices = @transform_1, window_bounds = array<i64: 4, 128>}, {pipeline_mode = #tpu.pipeline_mode<synchronous>, transform_indices = @transform_2, window_bounds = array<i64: 1, 128>}, {pipeline_mode = #tpu.pipeline_mode<synchronous>, transform_indices = @transform_3, window_bounds = array<i64: 3, 128>}, {pipeline_mode = #tpu.pipeline_mode<synchronous>, transform_indices = @transform_4, window_bounds = array<i64: 128, 128>}, {pipeline_mode = #tpu.pipeline_mode<synchronous>, transform_indices = @transform_5, window_bounds = array<i64: 1, 128>}, {transform_indices = @transform_6, window_bounds = array<i64: 1, 16, 128>}]} {
    %c0_i32 = arith.constant 0 : i32
    %0 = arith.cmpi eq, %arg1, %c0_i32 : i32
    %1 = arith.extui %0 : i1 to i32
    %c0_i32_0 = arith.constant 0 : i32
    %2 = arith.cmpi ne, %1, %c0_i32_0 : i32
    scf.if %2 {
      %cst_41 = arith.constant 0.000000e+00 : f32
      %68 = vector.broadcast %cst_41 : f32 to vector<8x128xf32>
      %c0_42 = arith.constant 0 : index
      %c0_43 = arith.constant 0 : index
      %69 = vector.load %arg9[%c0_42, %c0_43] : memref<8x128xf32, #tpu.memory_space<vmem>>, vector<8x128xf32>
      tpu.vector_store %arg9[%c0_42, %c0_43], %68 {strides = array<i32>} : memref<8x128xf32, #tpu.memory_space<vmem>>, vector<8x128xf32>,
    } else {
    }
    %c0 = arith.constant 0 : index
    %c0_1 = arith.constant 0 : index
    %c0_2 = arith.constant 0 : index
    %3 = vector.load %arg2[%c0, %c0_1, %c0_2] : memref<1x16x4xf32, #tpu.memory_space<vmem>>, vector<1x16x4xf32>
    %4 = vector.shape_cast %3 : vector<1x16x4xf32> to vector<16x4xf32>
    %c0_3 = arith.constant 0 : index
    %c0_4 = arith.constant 0 : index
    %5 = vector.load %arg3[%c0_3, %c0_4] : memref<4x128xf32, #tpu.memory_space<vmem>>, vector<4x128xf32>
    %cst = arith.constant dense<0.000000e+00> : vector<16x128xf32>
    %6 = tpu.matmul %4, %5, %cst {dimension_numbers = #tpu.dot_dimension_numbers<[1], [0], [0], [1], [0, 0, 1, 1], [], []>} : vector<16x4xf32>, vector<4x128xf32>, vector<16x128xf32> -> vector<16x128xf32>
    %c0_5 = arith.constant 0 : index
    %c0_6 = arith.constant 0 : index
    %7 = vector.load %arg4[%c0_5, %c0_6] : memref<1x128xf32, #tpu.memory_space<vmem>>, vector<1x128xf32>
    %8 = vector.broadcast %7 : vector<1x128xf32> to vector<16x128xf32>
    %9 = arith.addf %6, %8 : vector<16x128xf32>
    %c2 = arith.constant 2 : index
    %c0_7 = arith.constant 0 : index
    %10 = vector.load %arg5[%c2, %c0_7] : memref<3x128xf32, #tpu.memory_space<vmem>>, vector<1x128xf32>
    %11 = vector.broadcast %10 : vector<1x128xf32> to vector<16x128xf32>
    %12 = arith.mulf %9, %11 : vector<16x128xf32>
    %c2_i32 = arith.constant 2 : i32
    %13 = tpu.dynamic_rotate %9 by %c2_i32 dim 0 : vector<16x128xf32>, i32 -> vector<16x128xf32>
    %c0_8 = arith.constant 0 : index
    %c0_9 = arith.constant 0 : index
    %14 = vector.load %arg5[%c0_8, %c0_9] : memref<3x128xf32, #tpu.memory_space<vmem>>, vector<1x128xf32>
    %15 = vector.broadcast %14 : vector<1x128xf32> to vector<16x128xf32>
    %16 = arith.mulf %13, %15 : vector<16x128xf32>
    %17 = arith.addf %12, %16 : vector<16x128xf32>
    %c1_i32 = arith.constant 1 : i32
    %18 = tpu.dynamic_rotate %9 by %c1_i32 dim 0 : vector<16x128xf32>, i32 -> vector<16x128xf32>
    %c1 = arith.constant 1 : index
    %c0_10 = arith.constant 0 : index
    %19 = vector.load %arg5[%c1, %c0_10] : memref<3x128xf32, #tpu.memory_space<vmem>>, vector<1x128xf32>
    %20 = vector.broadcast %19 : vector<1x128xf32> to vector<16x128xf32>
    %21 = arith.mulf %18, %20 : vector<16x128xf32>
    %22 = arith.addf %17, %21 : vector<16x128xf32>
    %23 = vector.extract_strided_slice %9 {offsets = [0, 0], sizes = [8, 128], strides = [1, 1]} : vector<16x128xf32> to vector<8x128xf32>
    %c0_11 = arith.constant 0 : index
    %c0_12 = arith.constant 0 : index
    %24 = vector.load %arg9[%c0_11, %c0_12] : memref<8x128xf32, #tpu.memory_space<vmem>>, vector<8x128xf32>
    %25 = tpu.iota {dimensions = array<i32: 0>} : vector<8x1xi32>
    %26 = vector.broadcast %10 : vector<1x128xf32> to vector<8x128xf32>
    %27 = arith.mulf %23, %26 : vector<8x128xf32>
    %c2_i32_13 = arith.constant 2 : i32
    %28 = tpu.dynamic_rotate %23 by %c2_i32_13 dim 0 : vector<8x128xf32>, i32 -> vector<8x128xf32>
    %c2_i32_14 = arith.constant 2 : i32
    %29 = tpu.dynamic_rotate %24 by %c2_i32_14 dim 0 : vector<8x128xf32>, i32 -> vector<8x128xf32>
    %c2_i32_15 = arith.constant 2 : i32
    %30 = vector.broadcast %c2_i32_15 : i32 to vector<8x1xi32>
    %31 = arith.cmpi sge, %25, %30 : vector<8x1xi32>
    %32 = vector.shape_cast %31 : vector<8x1xi1> to vector<8x1xi1>
    %33 = vector.broadcast %32 : vector<8x1xi1> to vector<8x128xi1>
    %34 = arith.select %33, %28, %29 : vector<8x128xi1>, vector<8x128xf32>
    %c0_16 = arith.constant 0 : index
    %c0_17 = arith.constant 0 : index
    %35 = vector.load %arg5[%c0_16, %c0_17] : memref<3x128xf32, #tpu.memory_space<vmem>>, vector<1x128xf32>
    %36 = vector.broadcast %35 : vector<1x128xf32> to vector<8x128xf32>
    %37 = arith.mulf %34, %36 : vector<8x128xf32>
    %38 = arith.addf %27, %37 : vector<8x128xf32>
    %c1_i32_18 = arith.constant 1 : i32
    %39 = tpu.dynamic_rotate %23 by %c1_i32_18 dim 0 : vector<8x128xf32>, i32 -> vector<8x128xf32>
    %c1_i32_19 = arith.constant 1 : i32
    %40 = tpu.dynamic_rotate %24 by %c1_i32_19 dim 0 : vector<8x128xf32>, i32 -> vector<8x128xf32>
    %c1_i32_20 = arith.constant 1 : i32
    %41 = vector.broadcast %c1_i32_20 : i32 to vector<8x1xi32>
    %42 = arith.cmpi sge, %25, %41 : vector<8x1xi32>
    %43 = vector.shape_cast %42 : vector<8x1xi1> to vector<8x1xi1>
    %44 = vector.broadcast %43 : vector<8x1xi1> to vector<8x128xi1>
    %45 = arith.select %44, %39, %40 : vector<8x128xi1>, vector<8x128xf32>
    %c1_21 = arith.constant 1 : index
    %c0_22 = arith.constant 0 : index
    %46 = vector.load %arg5[%c1_21, %c0_22] : memref<3x128xf32, #tpu.memory_space<vmem>>, vector<1x128xf32>
    %47 = vector.broadcast %46 : vector<1x128xf32> to vector<8x128xf32>
    %48 = arith.mulf %45, %47 : vector<8x128xf32>
    %49 = arith.addf %38, %48 : vector<8x128xf32>
    %50 = vector.extract_strided_slice %9 {offsets = [8, 0], sizes = [8, 128], strides = [1, 1]} : vector<16x128xf32> to vector<8x128xf32>
    %c0_23 = arith.constant 0 : index
    %c0_24 = arith.constant 0 : index
    %51 = vector.load %arg9[%c0_23, %c0_24] : memref<8x128xf32, #tpu.memory_space<vmem>>, vector<8x128xf32>
    tpu.vector_store %arg9[%c0_23, %c0_24], %50 {strides = array<i32>} : memref<8x128xf32, #tpu.memory_space<vmem>>, vector<8x128xf32>,
    %c0_25 = arith.constant 0 : index
    %c0_26 = arith.constant 0 : index
    %52 = vector.load %arg6[%c0_25, %c0_26] : memref<128x128xf32, #tpu.memory_space<vmem>>, vector<128x128xf32>
    %cst_27 = arith.constant dense<0.000000e+00> : vector<16x128xf32>
    %53 = tpu.matmul %22, %52, %cst_27 {dimension_numbers = #tpu.dot_dimension_numbers<[1], [0], [0], [1], [0, 0, 1, 1], [], []>} : vector<16x128xf32>, vector<128x128xf32>, vector<16x128xf32> -> vector<16x128xf32>
    %c0_28 = arith.constant 0 : index
    %c0_29 = arith.constant 0 : index
    %54 = vector.load %arg7[%c0_28, %c0_29] : memref<1x128xf32, #tpu.memory_space<vmem>>, vector<1x128xf32>
    %55 = vector.broadcast %54 : vector<1x128xf32> to vector<16x128xf32>
    %56 = arith.addf %53, %55 : vector<16x128xf32>
    %c0_30 = arith.constant 0 : index
    %c0_31 = arith.constant 0 : index
    %c0_32 = arith.constant 0 : index
    %57 = vector.load %arg8[%c0_30, %c0_31, %c0_32] : memref<1x16x128xf32, #tpu.memory_space<vmem>>, vector<1x16x128xf32>
    %58 = vector.shape_cast %57 : vector<1x16x128xf32> to vector<16x128xf32>
    %59 = vector.shape_cast %56 : vector<16x128xf32> to vector<1x16x128xf32>
    tpu.vector_store %arg8[%c0_30, %c0_31, %c0_32], %59 {strides = array<i32>} : memref<1x16x128xf32, #tpu.memory_space<vmem>>, vector<1x16x128xf32>,
    %c0_33 = arith.constant 0 : index
    %c0_34 = arith.constant 0 : index
    %60 = vector.load %arg6[%c0_33, %c0_34] : memref<128x128xf32, #tpu.memory_space<vmem>>, vector<128x128xf32>
    %cst_35 = arith.constant dense<0.000000e+00> : vector<8x128xf32>
    %61 = tpu.matmul %49, %60, %cst_35 {dimension_numbers = #tpu.dot_dimension_numbers<[1], [0], [0], [1], [0, 0, 1, 1], [], []>} : vector<8x128xf32>, vector<128x128xf32>, vector<8x128xf32> -> vector<8x128xf32>
    %c0_36 = arith.constant 0 : index
    %c0_37 = arith.constant 0 : index
    %62 = vector.load %arg7[%c0_36, %c0_37] : memref<1x128xf32, #tpu.memory_space<vmem>>, vector<1x128xf32>
    %63 = vector.broadcast %62 : vector<1x128xf32> to vector<8x128xf32>
    %64 = arith.addf %61, %63 : vector<8x128xf32>
    %c0_38 = arith.constant 0 : index
    %c0_39 = arith.constant 0 : index
    %c0_40 = arith.constant 0 : index
    %65 = vector.load %arg8[%c0_38, %c0_39, %c0_40] : memref<1x16x128xf32, #tpu.memory_space<vmem>>, vector<1x8x128xf32>
    %66 = vector.shape_cast %65 : vector<1x8x128xf32> to vector<8x128xf32>
    %67 = vector.shape_cast %64 : vector<8x128xf32> to vector<1x8x128xf32>
    tpu.vector_store %arg8[%c0_38, %c0_39, %c0_40], %67 {strides = array<i32>} : memref<1x16x128xf32, #tpu.memory_space<vmem>>, vector<1x8x128xf32>,
    return
  }
  func.func @transform_0(%arg0: i32, %arg1: i32) -> (i32, i32, i32) {
    %c0_i32 = arith.constant 0 : i32
    %c0_i32_0 = arith.constant 0 : i32
    return %arg0, %arg1, %c0_i32 : i32, i32, i32
  }
  func.func @transform_1(%arg0: i32, %arg1: i32) -> (i32, i32) {
    %c0_i32 = arith.constant 0 : i32
    %c0_i32_0 = arith.constant 0 : i32
    %c0_i32_1 = arith.constant 0 : i32
    return %c0_i32, %c0_i32_0 : i32, i32
  }
  func.func @transform_2(%arg0: i32, %arg1: i32) -> (i32, i32) {
    %c0_i32 = arith.constant 0 : i32
    %c0_i32_0 = arith.constant 0 : i32
    %c0_i32_1 = arith.constant 0 : i32
    return %c0_i32, %c0_i32_0 : i32, i32
  }
  func.func @transform_3(%arg0: i32, %arg1: i32) -> (i32, i32) {
    %c0_i32 = arith.constant 0 : i32
    %c0_i32_0 = arith.constant 0 : i32
    %c0_i32_1 = arith.constant 0 : i32
    return %c0_i32, %c0_i32_0 : i32, i32
  }
  func.func @transform_4(%arg0: i32, %arg1: i32) -> (i32, i32) {
    %c0_i32 = arith.constant 0 : i32
    %c0_i32_0 = arith.constant 0 : i32
    %c0_i32_1 = arith.constant 0 : i32
    return %c0_i32, %c0_i32_0 : i32, i32
  }
  func.func @transform_5(%arg0: i32, %arg1: i32) -> (i32, i32) {
    %c0_i32 = arith.constant 0 : i32
    %c0_i32_0 = arith.constant 0 : i32
    %c0_i32_1 = arith.constant 0 : i32
    return %c0_i32, %c0_i32_0 : i32, i32
  }
  func.func @transform_6(%arg0: i32, %arg1: i32) -> (i32, i32, i32) {
    %c0_i32 = arith.constant 0 : i32
    %c0_i32_0 = arith.constant 0 : i32
    return %arg0, %arg1, %c0_i32 : i32, i32, i32
  }
}

</mosaic_0001>

<bundles_post_ra>
// kernel: tpu_custom_call.1
= control target key start
LH: loop header
LB: loop body
LE: loop exit
PB: predicated region body
PF: predicated region fallthrough
CT: control target
= control target key end

     0   :  { %11 = vsyncpa [#allocation4], 0  ;;  %s974_s0 = inlined_call_operand.vmem [shape: f32[2,16,4], index: 0, kind: input, shape index: {}]   ;;  %s975_s1 = inlined_call_operand.vmem [shape: f32[4,128], index: 1, kind: input, shape index: {}]   ;;  %s976_s2 = inlined_call_operand.vmem [shape: f32[1,128], index: 2, kind: input, shape index: {}]   ;;  %s977_s3 = inlined_call_operand.vmem [shape: f32[3,128], index: 3, kind: input, shape index: {}]   ;;  %s978_s4 = inlined_call_operand.hbm [shape: f32[128,128], index: 4, kind: input, shape index: {}]   ;;  %s979_s5 = inlined_call_operand.vmem [shape: f32[1,128], index: 5, kind: input, shape index: {}]   ;;  %s980_s6 = inlined_call_operand.hbm [shape: f32[2,16,128], index: 6, kind: output, shape index: {}]  }
   0x1   :  { %12 = vsyncpa [#allocation5], 0 }
   0x2   :  { %14 = vsyncpa [#allocation5 + $0x1], 0  ;;  %s851_s21 = smov 0   ;;  %s853_s22 = smov 0  }
   0x3   :  { %s855_s23 = smov 0   ;;  %s857_s24 = smov 0  }
   0x4   :  { %s859_s25 = smov 0   ;;  %s861_s26 = smov 0  }
   0x5 LB: > { %s583_s27 = sadd.s32 4294967295, %s808_s26   ;;  %s584_s28 = sadd.s32 4294967294, %s808_s26   ;;  %s808_s26 = sphi %s861_s26, %s20_s26   ;;  %s804_s25 = sphi %s859_s25, %s987_s25   ;;  %s800_s24 = sphi %s857_s24, %s986_s24   ;;  %s796_s23 = sphi %s855_s23, %s985_s23   ;;  %s792_s22 = sphi %s853_s22, %s984_s22   ;;  %s788_s21 = sphi %s851_s21, %s983_s21  }
   0x6   : > { %s32_s29 = sadd.s32 1, %s804_s25  ;;  %s174_s30 = sadd.s32 1, %s796_s23 }
   0x7   : > { %p34_p0 = scmp.ge.s32.totalorder %s32_s29, 2  ;;  %p184_p1 = scmp.ne.s32.totalorder %s796_s23, %s792_s22 }
   0x8   : > { %p185_p2 = scmp.eq.s32.totalorder %s583_s27, 1  ;;  %p190_p3 = scmp.ne.s32.totalorder %s792_s22, %s788_s21 }
   0x9   : > { %s989_s29 = smov (%p34_p0, %s32_s29), 0  ;;  %p191_p5 = scmp.eq.s32.totalorder %s584_s28, 1 }
   0xa   : > { %p891_p4 = por %p185_p2, %p184_p1  ;;  %s169_s8 = ssub.s32 %s804_s25, %s989_s29 }
   0xb   : > { %p585_p6 = scmp.ge.s32.totalorder %s808_s26, 1  ;;  %p172_p7 = scmp.eq.s32.totalorder %s169_s8, 0 }
   0xc   : > { %p898_p8 = por %p191_p5, %p190_p3  ;;  %p198_p9 = scmp.lt.s32.totalorder %s808_s26, 3 }
   0xd   : > { %s904_s10 = scalar_select %p172_p7, %s796_s23, %s174_s30  }
   0xe   : > { %p199_p10 = pnand %p585_p6, %p198_p9  ;;  %p633_p11 = scmp.eq.s32.totalorder %s583_s27, 0 }
   0xf   : > { %s218_s13 = sshll.u32 %s978_s4, 4  ;;  %s810_s14 = smov [#allocation3]   ;;  %s219_s13 = int_to_ptr.hbm [resolvable:$true] %s218_s13 }
  0x10   : > { %p625_p12 = pneg %p199_p10  ;;  %s220_s15 = sshll.u32 %s810_s14, 4  ;;  %s221_s15 = int_to_ptr.vmem [resolvable:$true] %s220_s15 }
  0x11   : > { %s811_s16 = smov 128   ;;  %s812_s17 = smov 8  }
  0x12   : > { %p626_p13 = pnand %p633_p11, %p625_p12  ;;  %252 = sbr.rel (%p199_p10) target bundleno = 314 (0x13a), region = 44 }
  0x14   : > { %628 = dma.hbm_to_vmem [thread:$0]  (!%p626_p13), %s219_s13, 2048, %s221_s15, [#allocation4], %s811_s16, %s811_s16, %s812_s17  }
  0x17   : > { %779 = dma.done.wait (%p633_p11), [#allocation4], 2048  }
  0x18   : > { %781 = vsyncadd (%p633_p11), [#allocation4], 4294965248  ;;  %p288_p0 = scmp.lt.s32.totalorder %s800_s24, 1  ;;  %vm317_vm0 = vcmask 1043456   ;;  %vm310_vm1 = vcmask 31744   ;;  %v448_v2 = vld [vmem:[#allocation3 + $0x78] sm:$0xff]  ;;  %v350_v19 = vlaneseq }
  0x19   : > { %v305_v0 = vld [vmem:[%s975_s1] sm:$0xf]  ;;  %v447_v3 = vld [vmem:[#allocation3 + $0x70] sm:$0xff]  ;;  %453 = vmatpush.msra.mxu2 %v448_v2  ;;  %v446_v4 = vld [vmem:[#allocation3 + $0x68] sm:$0xff]  ;;  %408 = vmatpush.msra.mxu1 %v448_v2  ;;  %v813_v24 = vmov 0.0   ;;  %s602_s30 = sshll.u32 %s800_s24, 4 }
  0x1a   : > { %s289_s18 = scalar_select %p288_p0, %s800_s24, 1  ;;  %593 = vmatpush.msk.msra.mxu0 %vm317_vm0, %v305_v0  ;;  %603 = vmatpush.msra.mxu3 %v448_v2  ;;  %v445_v5 = vld [vmem:[#allocation3 + $0x60] sm:$0xff]  ;;  %v444_v7 = vld [vmem:[#allocation3 + $0x58] sm:$0xff]  ;;  %v443_v8 = vld [vmem:[#allocation3 + $0x50] sm:$0xff]  ;;  %v351_v21 = vshrl.u32 %v350_v19, 7  ;;  %v373_v25 = vrot.slane %v813_v24, 6 }
  0x1b   : > { %454 = vmatpush.msra.mxu2 %v447_v3  ;;  %409 = vmatpush.msra.mxu1 %v447_v3  ;;  %v442_v9 = vld [vmem:[#allocation3 + $0x48] sm:$0xff]  ;;  %v441_v10 = vld [vmem:[#allocation3 + $0x40] sm:$0xff]  ;;  %v440_v11 = vld [vmem:[#allocation3 + $0x38] sm:$0xff]  ;;  %v380_v26 = vrot.slane %v813_v24, 7  ;;  %s488_s12 = scalar_lea.hbm %s980_s6, %s602_s30  ;;  %s746_s30 = scalar_lea.hbm %s980_s6, 32 }
  0x1c   : > { %s601_s19 = sshll.u32 %s289_s18, 4  ;;  %604 = vmatpush.msra.mxu3 %v447_v3  ;;  %v439_v12 = vld [vmem:[#allocation3 + $0x30] sm:$0xff]  ;;  %v438_v13 = vld [vmem:[#allocation3 + $0x28] sm:$0xff]  ;;  %v437_v14 = vld [vmem:[#allocation3 + $0x20] sm:$0xff]  ;;  %vm374_vm2 = vcmp.ge.s32.totalorder %v351_v21, 2  ;;  %vm381_vm3 = vcmp.ge.s32.totalorder %v351_v21, 1 }
  0x1d   : > { %s295_s28 = scalar_lea.vmem %s974_s0, %s601_s19  ;;  %455 = vmatpush.msra.mxu2 %v446_v4  ;;  %410 = vmatpush.msra.mxu1 %v446_v4  ;;  %v436_v15 = vld [vmem:[#allocation3 + $0x18] sm:$0xff]  ;;  %v435_v16 = vld [vmem:[#allocation3 + $0x10] sm:$0xff]  ;;  %v434_v17 = vld [vmem:[#allocation3 + $0x8] sm:$0xff]  ;;  %vm352_vm4 = vcmp.lt.s32.totalorder %v351_v21, 2  ;;  %vm363_vm5 = vcmp.lt.s32.totalorder %v351_v21, 1  ;;  %s284_s19 = sand.u32 1, %s792_s22  }
  0x1e   : > { %v303_v1 = vld [vmem:[%s295_s28] sm:$0xff]  ;;  %v304_v6 = vld [vmem:[%s295_s28 + $0x8] sm:$0xff]  ;;  %605 = vmatpush.msra.mxu3 %v446_v4  ;;  %s590_s28 = sshll.u32 %s284_s19, 4  ;;  %s491_s17 = sshll.u32 %s488_s12, 4  ;;  %s492_s17 = int_to_ptr.hbm [resolvable:$true] %s491_s17 }
  0x1f   : > { %594 = vmatmul.msk.f32.vlgmr.msra.gmra.mxu0 %vm310_vm1, %v303_v1  ;;  %456 = vmatpush.msra.mxu2 %v445_v5  ;;  %v433_v18 = vld [vmem:[#allocation3] sm:$0xff]  ;;  %s286_s13 = scalar_lea.vmem [#allocation6], %s590_s28  ;;  %s475_s24 = scalar_lea.sflag [#allocation5], %s284_s19 }
  0x20   : > { %411 = vmatpush.msra.mxu1 %v445_v5  ;;  %606 = vmatpush.msra.mxu3 %v445_v5  ;;  %v690_v20 = vld [vmem:[%s976_s2] ss:$0 sm:$0xff]  ;;  %v691_v27 = vld [vmem:[%s977_s3 + $0x2] ss:$0 sm:$0xff]  ;;  %v693_v31 = vld [vmem:[%s977_s3 + $0x1] ss:$0 sm:$0xff] }
  0x21   : > { %457 = vmatpush.msra.mxu2 %v444_v7  ;;  %v692_v28 = vld [vmem:[%s977_s3] ss:$0 sm:$0xff]  ;;  %s489_s16 = sshll.u32 %s286_s13, 4  ;;  %s740_s18 = sshra.s32 %s492_s17, 4  ;;  %s490_s16 = int_to_ptr.vmem [resolvable:$true] %s489_s16  ;;  %s741_s18 = int_to_ptr.hbm [resolvable:$true] %s740_s18 }
  0x22   : > { %412 = vmatpush.msra.mxu1 %v444_v7  ;;  %607 = vmatpush.msra.mxu3 %v444_v7  ;;  %v694_v56 = vld [vmem:[%s979_s5] ss:$0 sm:$0xff]  ;;  %s742_s20 = scalar_lea.hbm %s741_s18, 16  ;;  %p747_p5 = scmp.lt.s32.totalorder %s741_s18, %s980_s6 }
  0x23   : > { %458 = vmatpush.msra.mxu2 %v443_v8  ;;  %v695_v60 = vld [vmem:[%s979_s5] ss:$0 sm:$0xff]  ;;  %p743_p1 = scmp.ne.s32.totalorder %s741_s18, %s742_s20  ;;  %p748_p6 = scmp.lt.s32.totalorder %s746_s30, %s742_s20 }
  0x24   : > { %413 = vmatpush.msra.mxu1 %v443_v8  ;;  %608 = vmatpush.msra.mxu3 %v443_v8 }
  0x25   : > { %459 = vmatpush.msra.mxu2 %v442_v9  ;;  %p744_p2 = pnand %p743_p1, %p891_p4  ;;  %p749_p7 = por %p748_p6, %p747_p5 }
  0x26   : > { %414 = vmatpush.msra.mxu1 %v442_v9  ;;  %609 = vmatpush.msra.mxu3 %v442_v9 }
  0x27   : > { %595 = vmatmul.msk.f32.gmra.mxu0 %vm310_vm1, %v304_v6  ;;  %460 = vmatpush.msra.mxu2 %v441_v10  ;;  %p745_p3 = pneg %p744_p2 }
  0x28   : > { %415 = vmatpush.msra.mxu1 %v441_v10  ;;  %610 = vmatpush.msra.mxu3 %v441_v10 }
  0x29   : > { %461 = vmatpush.msra.mxu2 %v440_v11  ;;  %p750_p9 = pnand %p749_p7, %p745_p3 }
  0x2a   : > { %416 = vmatpush.msra.mxu1 %v440_v11  ;;  %611 = vmatpush.msra.mxu3 %v440_v11 }
  0x2b   : > { %462 = vmatpush.msra.mxu2 %v439_v12 }
  0x2c   : > { %417 = vmatpush.msra.mxu1 %v439_v12  ;;  %612 = vmatpush.msra.mxu3 %v439_v12 }
  0x2d   : > { %463 = vmatpush.msra.mxu2 %v438_v13 }
  0x2e   : > { %418 = vmatpush.msra.mxu1 %v438_v13  ;;  %613 = vmatpush.msra.mxu3 %v438_v13 }
  0x2f   : > { %464 = vmatpush.msra.mxu2 %v437_v14 }
  0x30   : > { %419 = vmatpush.msra.mxu1 %v437_v14  ;;  %614 = vmatpush.msra.mxu3 %v437_v14 }
  0x31   : > { %465 = vmatpush.msra.mxu2 %v436_v15 }
  0x32   : > { %420 = vmatpush.msra.mxu1 %v436_v15  ;;  %615 = vmatpush.msra.mxu3 %v436_v15 }
  0x33   : > { %466 = vmatpush.msra.mxu2 %v435_v16 }
  0x34   : > { %421 = vmatpush.msra.mxu1 %v435_v16  ;;  %616 = vmatpush.msra.mxu3 %v435_v16 }
  0x35   : > { %467 = vmatpush.msra.mxu2 %v434_v17 }
  0x36   : > { %422 = vmatpush.msra.mxu1 %v434_v17  ;;  %617 = vmatpush.msra.mxu3 %v434_v17 }
  0x37   : > { %468 = vmatpush.msra.mxu2 %v433_v18 }
  0x38   : > { %423 = vmatpush.msra.mxu1 %v433_v18  ;;  %618 = vmatpush.msra.mxu3 %v433_v18 }
  0x9c   : > { %v338_v22 = vpop.f32.mrf.mxu0 }
  0x9d   : > { %v339_v23 = vadd.f32 %v690_v20, %v338_v22 }
  0x9f   : > { %v348_v29 = vrot.slane %v339_v23, 6  ;;  %v361_v30 = vrot.slane %v339_v23, 7  ;;  %v346_v34 = vmul.f32 %v691_v27, %v339_v23 }
  0xa1   : > { %v377_v32 = vsel %vm374_vm2, %v348_v29, %v373_v25  ;;  %v384_v33 = vsel %vm381_vm3, %v361_v30, %v380_v26 }
  0xa2   : > { %v378_v35 = vmul.f32 %v692_v28, %v377_v32  ;;  %v385_v38 = vmul.f32 %v693_v31, %v384_v33 }
  0xa4   : > { %v341_v36 = vpop.f32.mrf.mxu0  ;;  %v379_v37 = vadd.f32 %v378_v35, %v346_v34 }
  0xa5   : > { %v342_v39 = vadd.f32 %v690_v20, %v341_v36 }
  0xa6   : > { %v386_v40 = vadd.f32 %v385_v38, %v379_v37 }
  0xa7   : > { %v349_v41 = vrot.slane %v342_v39, 6  ;;  %v362_v42 = vrot.slane %v342_v39, 7  ;;  %v347_v47 = vmul.f32 %v691_v27, %v342_v39 }
  0xa8   : > { %469 = vmatmul.f32.vlgmr.msra.gmra.mxu2 %v386_v40 }
  0xa9   : > { %v354_v43 = vsel %vm352_vm4, %v349_v41, %v348_v29  ;;  %v365_v44 = vsel %vm363_vm5, %v362_v42, %v361_v30  ;;  %v353_v45 = vsel %vm352_vm4, %v348_v29, %v349_v41  ;;  %v364_v46 = vsel %vm363_vm5, %v361_v30, %v362_v42 }
  0xaa   : > { %v357_v48 = vmul.f32 %v692_v28, %v354_v43  ;;  %v358_v49 = vmul.f32 %v692_v28, %v353_v45  ;;  %v368_v51 = vmul.f32 %v693_v31, %v365_v44  ;;  %v369_v53 = vmul.f32 %v693_v31, %v364_v46 }
  0xac   : > { %v359_v50 = vadd.f32 %v357_v48, %v346_v34  ;;  %v360_v52 = vadd.f32 %v358_v49, %v347_v47 }
  0xae   : > { %v370_v54 = vadd.f32 %v368_v51, %v359_v50  ;;  %v371_v55 = vadd.f32 %v369_v53, %v360_v52 }
  0xb0   : > { %424 = vmatmul.f32.vlgmr.msra.gmra.mxu1 %v370_v54  ;;  %427 = vmatmul.f32.vlgmr.msra.gmra.mxu3 %v371_v55 }
 0x12b   : > { %v470_v57 = vpop.f32.mrf.mxu2 }
 0x12c   : > { %v471_v58 = vadd.f32 %v694_v56, %v470_v57 }
 0x12d   : > { %v425_v59 = vpop.f32.mrf.mxu1 }
 0x12e   : > { %473 = vst [vmem:[%s286_s13] sm:$0xff] %v471_v58 }
 0x133   : > { %v428_v61 = vpop.f32.mrf.mxu3 }
 0x134   : > { %v429_v62 = vadd.f32 %v695_v60, %v428_v61 }
 0x136   : > { %432 = vst [vmem:[%s286_s13 + $0x8] sm:$0xff] %v429_v62 }
 0x137   : > { %753 = shalt.err (!%p750_p9)
}
 0x138   : > { %s814_s19 = smov 128   ;;  %s815_s12 = smov 8  }
 0x139   : > { %623 = dma.vmem_to_hbm [thread:$0]  (%p891_p4), %s490_s16, 256, %s492_s17, %s475_s24, %s814_s19, %s814_s19, %s815_s12  }
 0x13a PF: > { %p635_p10 = scmp.ge.s32.totalorder %s808_s26, 2  ;;  %s506_s13 = sand.u32 1, %s788_s21  }
 0x13b   : > { %s507_s14 = scalar_lea.sflag [#allocation5], %s506_s13 }
 0x13c   : > { %p630_p11 = pnand %p635_p10, %p898_p8 }
 0x13e   : > { %p631_p12 = pneg %p630_p11 }
 0x140   : > { %783 = dma.done.wait (%p631_p12), %s507_s14, 256  }
 0x141   : > { %785 = vsyncadd (%p631_p12), %s507_s14, 4294967040  ;;  %s20_s26 = sadd.s32 1, %s808_s26   ;;  %s983_s21 = smov %s792_s22 }
 0x142   : > { %p17_p13 = scmp.ge.s32.totalorder %s20_s26, 4   ;;  %s984_s22 = smov %s796_s23 }
 0x143   : > { %s985_s23 = smov %s904_s10  ;;  %s986_s24 = smov %s804_s25 }
 0x144   : > { %s987_s25 = smov %s989_s29  ;;  %19 = sbr.rel (!%p17_p13) target bundleno = 5 (0x5), region = 88 }
 0x149   :  { %513 = vsyncpa [#allocation4], 1 }
 0x14a   :  { %515 = vsyncpa [#allocation4 + $0x1], 1 }
 0x14b   :  { %516 = vsyncpa [#allocation5], 1 }
 0x14c   :  { %518 = vsyncpa [#allocation5 + $0x1], 1 }

// kernel: tpu_custom_call.1
= control target key start
LH: loop header
LB: loop body
LE: loop exit
PB: predicated region body
PF: predicated region fallthrough
CT: control target
= control target key end

     0   :  { %11 = vsyncpa [#allocation4], 0  ;;  %s974_s0 = inlined_call_operand.vmem [shape: f32[2,16,4], index: 0, kind: input, shape index: {}]   ;;  %s975_s1 = inlined_call_operand.vmem [shape: f32[4,128], index: 1, kind: input, shape index: {}]   ;;  %s976_s2 = inlined_call_operand.vmem [shape: f32[1,128], index: 2, kind: input, shape index: {}]   ;;  %s977_s3 = inlined_call_operand.vmem [shape: f32[3,128], index: 3, kind: input, shape index: {}]   ;;  %s978_s4 = inlined_call_operand.hbm [shape: f32[128,128], index: 4, kind: input, shape index: {}]   ;;  %s979_s5 = inlined_call_operand.vmem [shape: f32[1,128], index: 5, kind: input, shape index: {}]   ;;  %s980_s6 = inlined_call_operand.hbm [shape: f32[2,16,128], index: 6, kind: output, shape index: {}]  }
   0x1   :  { %12 = vsyncpa [#allocation5], 0 }
   0x2   :  { %14 = vsyncpa [#allocation5 + $0x1], 0  ;;  %s851_s21 = smov 0   ;;  %s853_s22 = smov 0  }
   0x3   :  { %s855_s23 = smov 0   ;;  %s857_s24 = smov 0  }
   0x4   :  { %s859_s25 = smov 0   ;;  %s861_s26 = smov 0  }
   0x5 LB: > { %s583_s27 = sadd.s32 4294967295, %s808_s26   ;;  %s584_s28 = sadd.s32 4294967294, %s808_s26   ;;  %s808_s26 = sphi %s861_s26, %s20_s26   ;;  %s804_s25 = sphi %s859_s25, %s987_s25   ;;  %s800_s24 = sphi %s857_s24, %s986_s24   ;;  %s796_s23 = sphi %s855_s23, %s985_s23   ;;  %s792_s22 = sphi %s853_s22, %s984_s22   ;;  %s788_s21 = sphi %s851_s21, %s983_s21  }
   0x6   : > { %s32_s29 = sadd.s32 1, %s804_s25  ;;  %s174_s30 = sadd.s32 1, %s796_s23 }
   0x7   : > { %p34_p0 = scmp.ge.s32.totalorder %s32_s29, 2  ;;  %p184_p1 = scmp.ne.s32.totalorder %s796_s23, %s792_s22 }
   0x8   : > { %p185_p2 = scmp.eq.s32.totalorder %s583_s27, 1  ;;  %p190_p3 = scmp.ne.s32.totalorder %s792_s22, %s788_s21 }
   0x9   : > { %s989_s29 = smov (%p34_p0, %s32_s29), 0  ;;  %p191_p5 = scmp.eq.s32.totalorder %s584_s28, 1 }
   0xa   : > { %p891_p4 = por %p185_p2, %p184_p1  ;;  %s169_s8 = ssub.s32 %s804_s25, %s989_s29 }
   0xb   : > { %p585_p6 = scmp.ge.s32.totalorder %s808_s26, 1  ;;  %p172_p7 = scmp.eq.s32.totalorder %s169_s8, 0 }
   0xc   : > { %p898_p8 = por %p191_p5, %p190_p3  ;;  %p198_p9 = scmp.lt.s32.totalorder %s808_s26, 3 }
   0xd   : > { %s904_s10 = scalar_select %p172_p7, %s796_s23, %s174_s30  }
   0xe   : > { %p199_p10 = pnand %p585_p6, %p198_p9  ;;  %p633_p11 = scmp.eq.s32.totalorder %s583_s27, 0 }
   0xf   : > { %s218_s13 = sshll.u32 %s978_s4, 4  ;;  %s810_s14 = smov [#allocation3]   ;;  %s219_s13 = int_to_ptr.hbm [resolvable:$true] %s218_s13 }
  0x10   : > { %p625_p12 = pneg %p199_p10  ;;  %s220_s15 = sshll.u32 %s810_s14, 4  ;;  %s221_s15 = int_to_ptr.vmem [resolvable:$true] %s220_s15 }
  0x11   : > { %s811_s16 = smov 128   ;;  %s812_s17 = smov 8  }
  0x12   : > { %p626_p13 = pnand %p633_p11, %p625_p12  ;;  %252 = sbr.rel (%p199_p10) target bundleno = 314 (0x13a), region = 44 }
  0x14   : > { %628 = dma.hbm_to_vmem [thread:$0]  (!%p626_p13), %s219_s13, 2048, %s221_s15, [#allocation4], %s811_s16, %s811_s16, %s812_s17  }
  0x17   : > { %779 = dma.done.wait (%p633_p11), [#allocation4], 2048  }
  0x18   : > { %781 = vsyncadd (%p633_p11), [#allocation4], 4294965248  ;;  %p288_p0 = scmp.lt.s32.totalorder %s800_s24, 1  ;;  %vm317_vm0 = vcmask 1043456   ;;  %vm310_vm1 = vcmask 31744   ;;  %v448_v2 = vld [vmem:[#allocation3 + $0x78] sm:$0xff]  ;;  %v350_v19 = vlaneseq }
  0x19   : > { %v305_v0 = vld [vmem:[%s975_s1] sm:$0xf]  ;;  %v447_v3 = vld [vmem:[#allocation3 + $0x70] sm:$0xff]  ;;  %453 = vmatpush.msra.mxu2 %v448_v2  ;;  %v446_v4 = vld [vmem:[#allocation3 + $0x68] sm:$0xff]  ;;  %408 = vmatpush.msra.mxu1 %v448_v2  ;;  %v813_v24 = vmov 0.0   ;;  %s602_s30 = sshll.u32 %s800_s24, 4 }
  0x1a   : > { %s289_s18 = scalar_select %p288_p0, %s800_s24, 1  ;;  %593 = vmatpush.msk.msra.mxu0 %vm317_vm0, %v305_v0  ;;  %603 = vmatpush.msra.mxu3 %v448_v2  ;;  %v445_v5 = vld [vmem:[#allocation3 + $0x60] sm:$0xff]  ;;  %v444_v7 = vld [vmem:[#allocation3 + $0x58] sm:$0xff]  ;;  %v443_v8 = vld [vmem:[#allocation3 + $0x50] sm:$0xff]  ;;  %v351_v21 = vshrl.u32 %v350_v19, 7  ;;  %v373_v25 = vrot.slane %v813_v24, 6 }
  0x1b   : > { %454 = vmatpush.msra.mxu2 %v447_v3  ;;  %409 = vmatpush.msra.mxu1 %v447_v3  ;;  %v442_v9 = vld [vmem:[#allocation3 + $0x48] sm:$0xff]  ;;  %v441_v10 = vld [vmem:[#allocation3 + $0x40] sm:$0xff]  ;;  %v440_v11 = vld [vmem:[#allocation3 + $0x38] sm:$0xff]  ;;  %v380_v26 = vrot.slane %v813_v24, 7  ;;  %s488_s12 = scalar_lea.hbm %s980_s6, %s602_s30  ;;  %s746_s30 = scalar_lea.hbm %s980_s6, 32 }
  0x1c   : > { %s601_s19 = sshll.u32 %s289_s18, 4  ;;  %604 = vmatpush.msra.mxu3 %v447_v3  ;;  %v439_v12 = vld [vmem:[#allocation3 + $0x30] sm:$0xff]  ;;  %v438_v13 = vld [vmem:[#allocation3 + $0x28] sm:$0xff]  ;;  %v437_v14 = vld [vmem:[#allocation3 + $0x20] sm:$0xff]  ;;  %vm374_vm2 = vcmp.ge.s32.totalorder %v351_v21, 2  ;;  %vm381_vm3 = vcmp.ge.s32.totalorder %v351_v21, 1 }
  0x1d   : > { %s295_s28 = scalar_lea.vmem %s974_s0, %s601_s19  ;;  %455 = vmatpush.msra.mxu2 %v446_v4  ;;  %410 = vmatpush.msra.mxu1 %v446_v4  ;;  %v436_v15 = vld [vmem:[#allocation3 + $0x18] sm:$0xff]  ;;  %v435_v16 = vld [vmem:[#allocation3 + $0x10] sm:$0xff]  ;;  %v434_v17 = vld [vmem:[#allocation3 + $0x8] sm:$0xff]  ;;  %vm352_vm4 = vcmp.lt.s32.totalorder %v351_v21, 2  ;;  %vm363_vm5 = vcmp.lt.s32.totalorder %v351_v21, 1  ;;  %s284_s19 = sand.u32 1, %s792_s22  }
  0x1e   : > { %v303_v1 = vld [vmem:[%s295_s28] sm:$0xff]  ;;  %v304_v6 = vld [vmem:[%s295_s28 + $0x8] sm:$0xff]  ;;  %605 = vmatpush.msra.mxu3 %v446_v4  ;;  %s590_s28 = sshll.u32 %s284_s19, 4  ;;  %s491_s17 = sshll.u32 %s488_s12, 4  ;;  %s492_s17 = int_to_ptr.hbm [resolvable:$true] %s491_s17 }
  0x1f   : > { %594 = vmatmul.msk.f32.vlgmr.msra.gmra.mxu0 %vm310_vm1, %v303_v1  ;;  %456 = vmatpush.msra.mxu2 %v445_v5  ;;  %v433_v18 = vld [vmem:[#allocation3] sm:$0xff]  ;;  %s286_s13 = scalar_lea.vmem [#allocation6], %s590_s28  ;;  %s475_s24 = scalar_lea.sflag [#allocation5], %s284_s19 }
  0x20   : > { %411 = vmatpush.msra.mxu1 %v445_v5  ;;  %606 = vmatpush.msra.mxu3 %v445_v5  ;;  %v690_v20 = vld [vmem:[%s976_s2] ss:$0 sm:$0xff]  ;;  %v691_v27 = vld [vmem:[%s977_s3 + $0x2] ss:$0 sm:$0xff]  ;;  %v693_v31 = vld [vmem:[%s977_s3 + $0x1] ss:$0 sm:$0xff] }
  0x21   : > { %457 = vmatpush.msra.mxu2 %v444_v7  ;;  %v692_v28 = vld [vmem:[%s977_s3] ss:$0 sm:$0xff]  ;;  %s489_s16 = sshll.u32 %s286_s13, 4  ;;  %s740_s18 = sshra.s32 %s492_s17, 4  ;;  %s490_s16 = int_to_ptr.vmem [resolvable:$true] %s489_s16  ;;  %s741_s18 = int_to_ptr.hbm [resolvable:$true] %s740_s18 }
  0x22   : > { %412 = vmatpush.msra.mxu1 %v444_v7  ;;  %607 = vmatpush.msra.mxu3 %v444_v7  ;;  %v694_v56 = vld [vmem:[%s979_s5] ss:$0 sm:$0xff]  ;;  %s742_s20 = scalar_lea.hbm %s741_s18, 16  ;;  %p747_p5 = scmp.lt.s32.totalorder %s741_s18, %s980_s6 }
  0x23   : > { %458 = vmatpush.msra.mxu2 %v443_v8  ;;  %v695_v60 = vld [vmem:[%s979_s5] ss:$0 sm:$0xff]  ;;  %p743_p1 = scmp.ne.s32.totalorder %s741_s18, %s742_s20  ;;  %p748_p6 = scmp.lt.s32.totalorder %s746_s30, %s742_s20 }
  0x24   : > { %413 = vmatpush.msra.mxu1 %v443_v8  ;;  %608 = vmatpush.msra.mxu3 %v443_v8 }
  0x25   : > { %459 = vmatpush.msra.mxu2 %v442_v9  ;;  %p744_p2 = pnand %p743_p1, %p891_p4  ;;  %p749_p7 = por %p748_p6, %p747_p5 }
  0x26   : > { %414 = vmatpush.msra.mxu1 %v442_v9  ;;  %609 = vmatpush.msra.mxu3 %v442_v9 }
  0x27   : > { %595 = vmatmul.msk.f32.gmra.mxu0 %vm310_vm1, %v304_v6  ;;  %460 = vmatpush.msra.mxu2 %v441_v10  ;;  %p745_p3 = pneg %p744_p2 }
  0x28   : > { %415 = vmatpush.msra.mxu1 %v441_v10  ;;  %610 = vmatpush.msra.mxu3 %v441_v10 }
  0x29   : > { %461 = vmatpush.msra.mxu2 %v440_v11  ;;  %p750_p9 = pnand %p749_p7, %p745_p3 }
  0x2a   : > { %416 = vmatpush.msra.mxu1 %v440_v11  ;;  %611 = vmatpush.msra.mxu3 %v440_v11 }
  0x2b   : > { %462 = vmatpush.msra.mxu2 %v439_v12 }
  0x2c   : > { %417 = vmatpush.msra.mxu1 %v439_v12  ;;  %612 = vmatpush.msra.mxu3 %v439_v12 }
  0x2d   : > { %463 = vmatpush.msra.mxu2 %v438_v13 }
  0x2e   : > { %418 = vmatpush.msra.mxu1 %v438_v13  ;;  %613 = vmatpush.msra.mxu3 %v438_v13 }
  0x2f   : > { %464 = vmatpush.msra.mxu2 %v437_v14 }
  0x30   : > { %419 = vmatpush.msra.mxu1 %v437_v14  ;;  %614 = vmatpush.msra.mxu3 %v437_v14 }
  0x31   : > { %465 = vmatpush.msra.mxu2 %v436_v15 }
  0x32   : > { %420 = vmatpush.msra.mxu1 %v436_v15  ;;  %615 = vmatpush.msra.mxu3 %v436_v15 }
  0x33   : > { %466 = vmatpush.msra.mxu2 %v435_v16 }
  0x34   : > { %421 = vmatpush.msra.mxu1 %v435_v16  ;;  %616 = vmatpush.msra.mxu3 %v435_v16 }
  0x35   : > { %467 = vmatpush.msra.mxu2 %v434_v17 }
  0x36   : > { %422 = vmatpush.msra.mxu1 %v434_v17  ;;  %617 = vmatpush.msra.mxu3 %v434_v17 }
  0x37   : > { %468 = vmatpush.msra.mxu2 %v433_v18 }
  0x38   : > { %423 = vmatpush.msra.mxu1 %v433_v18  ;;  %618 = vmatpush.msra.mxu3 %v433_v18 }
  0x9c   : > { %v338_v22 = vpop.f32.mrf.mxu0 }
  0x9d   : > { %v339_v23 = vadd.f32 %v690_v20, %v338_v22 }
  0x9f   : > { %v348_v29 = vrot.slane %v339_v23, 6  ;;  %v361_v30 = vrot.slane %v339_v23, 7  ;;  %v346_v34 = vmul.f32 %v691_v27, %v339_v23 }
  0xa1   : > { %v377_v32 = vsel %vm374_vm2, %v348_v29, %v373_v25  ;;  %v384_v33 = vsel %vm381_vm3, %v361_v30, %v380_v26 }
  0xa2   : > { %v378_v35 = vmul.f32 %v692_v28, %v377_v32  ;;  %v385_v38 = vmul.f32 %v693_v31, %v384_v33 }
  0xa4   : > { %v341_v36 = vpop.f32.mrf.mxu0  ;;  %v379_v37 = vadd.f32 %v378_v35, %v346_v34 }
  0xa5   : > { %v342_v39 = vadd.f32 %v690_v20, %v341_v36 }
  0xa6   : > { %v386_v40 = vadd.f32 %v385_v38, %v379_v37 }
  0xa7   : > { %v349_v41 = vrot.slane %v342_v39, 6  ;;  %v362_v42 = vrot.slane %v342_v39, 7  ;;  %v347_v47 = vmul.f32 %v691_v27, %v342_v39 }
  0xa8   : > { %469 = vmatmul.f32.vlgmr.msra.gmra.mxu2 %v386_v40 }
  0xa9   : > { %v354_v43 = vsel %vm352_vm4, %v349_v41, %v348_v29  ;;  %v365_v44 = vsel %vm363_vm5, %v362_v42, %v361_v30  ;;  %v353_v45 = vsel %vm352_vm4, %v348_v29, %v349_v41  ;;  %v364_v46 = vsel %vm363_vm5, %v361_v30, %v362_v42 }
  0xaa   : > { %v357_v48 = vmul.f32 %v692_v28, %v354_v43  ;;  %v358_v49 = vmul.f32 %v692_v28, %v353_v45  ;;  %v368_v51 = vmul.f32 %v693_v31, %v365_v44  ;;  %v369_v53 = vmul.f32 %v693_v31, %v364_v46 }
  0xac   : > { %v359_v50 = vadd.f32 %v357_v48, %v346_v34  ;;  %v360_v52 = vadd.f32 %v358_v49, %v347_v47 }
  0xae   : > { %v370_v54 = vadd.f32 %v368_v51, %v359_v50  ;;  %v371_v55 = vadd.f32 %v369_v53, %v360_v52 }
  0xb0   : > { %424 = vmatmul.f32.vlgmr.msra.gmra.mxu1 %v370_v54  ;;  %427 = vmatmul.f32.vlgmr.msra.gmra.mxu3 %v371_v55 }
 0x12b   : > { %v470_v57 = vpop.f32.mrf.mxu2 }
 0x12c   : > { %v471_v58 = vadd.f32 %v694_v56, %v470_v57 }
 0x12d   : > { %v425_v59 = vpop.f32.mrf.mxu1 }
 0x12e   : > { %473 = vst [vmem:[%s286_s13] sm:$0xff] %v471_v58 }
 0x133   : > { %v428_v61 = vpop.f32.mrf.mxu3 }
 0x134   : > { %v429_v62 = vadd.f32 %v695_v60, %v428_v61 }
 0x136   : > { %432 = vst [vmem:[%s286_s13 + $0x8] sm:$0xff] %v429_v62 }
 0x137   : > { %753 = shalt.err (!%p750_p9)
}
 0x138   : > { %s814_s19 = smov 128   ;;  %s815_s12 = smov 8  }
 0x139   : > { %623 = dma.vmem_to_hbm [thread:$0]  (%p891_p4), %s490_s16, 256, %s492_s17, %s475_s24, %s814_s19, %s814_s19, %s815_s12  }
 0x13a PF: > { %p635_p10 = scmp.ge.s32.totalorder %s808_s26, 2  ;;  %s506_s13 = sand.u32 1, %s788_s21  }
 0x13b   : > { %s507_s14 = scalar_lea.sflag [#allocation5], %s506_s13 }
 0x13c   : > { %p630_p11 = pnand %p635_p10, %p898_p8 }
 0x13e   : > { %p631_p12 = pneg %p630_p11 }
 0x140   : > { %783 = dma.done.wait (%p631_p12), %s507_s14, 256  }
 0x141   : > { %785 = vsyncadd (%p631_p12), %s507_s14, 4294967040  ;;  %s20_s26 = sadd.s32 1, %s808_s26   ;;  %s983_s21 = smov %s792_s22 }
 0x142   : > { %p17_p13 = scmp.ge.s32.totalorder %s20_s26, 4   ;;  %s984_s22 = smov %s796_s23 }
 0x143   : > { %s985_s23 = smov %s904_s10  ;;  %s986_s24 = smov %s804_s25 }
 0x144   : > { %s987_s25 = smov %s989_s29  ;;  %19 = sbr.rel (!%p17_p13) target bundleno = 5 (0x5), region = 88 }
 0x149   :  { %513 = vsyncpa [#allocation4], 1 }
 0x14a   :  { %515 = vsyncpa [#allocation4 + $0x1], 1 }
 0x14b   :  { %516 = vsyncpa [#allocation5], 1 }
 0x14c   :  { %518 = vsyncpa [#allocation5 + $0x1], 1 }

</bundles_post_ra>
